<compile_context>
chip_gen: v7x
topology: tpu7x:2x2x1
jax: 0.10.0
libtpu: 0.0.40
codegen_flags: <defaults>
</compile_context>

<pallas_src>
import functools

import jax
import jax.numpy as jnp
from jax.experimental import pallas as pl
from jax.experimental.pallas import tpu as pltpu

K = 3            # kernel_size (module default)
POOL_STRIDE = 2  # stride of the pooling conv
DILATION = 2     # dilation of the residual convs
POOL_PAD = (K - 1) // 2                     # = 1  (pooling-conv padding)
RES_PAD = (DILATION * (K - 1) + 1) // 2     # = 2  (residual-conv padding; same-length for K=3, D=2)
LANES = 128
LPAD = 8         # sublane-aligned left halo offset inside the padded activation scratch

# Single 3*Cp-deep contraction per residual conv (fills the 256x256 MXU on v6e/v7x).
# Set False on v5e (128x128 MXU is already full; pairing only adds lane-copy cost) --
# that path uses chained value accumulation over the 3 taps instead.
WIDEN_CONTRACTION = True


def _round_up(x, m):
    return (x + m - 1) // m * m


def _pooling_block_kernel(x_ref, wp_ref, bp_ref,
                          s1_ref, t1_ref, w1_ref, b1_ref,
                          w2_ref, b2_ref,
                          out_ref, apad_ref):
    """One batch element per grid step (channels-last; channels on the 128-lane axis).

    x_ref  : (1, Lout, K*Cin) bf16 im2col slab of the input (built in the wrapper)
    wp_ref : (K*Cin, Cp)      bf16 pooling-conv weights (im2col layout)
    w1_ref : (K*Cp, Cp)       bf16 residual conv 1 (second BatchNorm pre-folded), taps stacked on rows
    w2_ref : (K*Cp, Cp)       bf16 residual conv 2
    bp/s1/t1/b1/b2 : (1, Cp)  f32 per-channel vectors (zero-padded to Cp lanes)
    out_ref: (1, Lout, Cp)    f32
    apad_ref: VMEM (Lout + 2*LPAD, Cp) bf16 zero-edged activation scratch
    """
    Lout, Cp = out_ref.shape[1], out_ref.shape[2]

    # Zero only the halo rows the dilated taps read (interior is overwritten each pass).
    apad_ref[LPAD - RES_PAD:LPAD, :] = jnp.zeros((RES_PAD, Cp), apad_ref.dtype)
    apad_ref[LPAD + Lout:LPAD + Lout + RES_PAD, :] = jnp.zeros((RES_PAD, Cp), apad_ref.dtype)

    # ---------- pooling conv: one bf16 matmul over the im2col slab ----------
    pool = jnp.dot(x_ref[0], wp_ref[...],
                   preferred_element_type=jnp.float32) + bp_ref[...]        # (Lout, Cp) f32

    # ---------- dilated conv (stride 1, padding RES_PAD) over the zero-edged scratch ----
    def dilated_conv(w_ref):
        # Shifted full-length windows (loads only; no masked sub-slice stores / ref RMW).
        wins = [apad_ref[LPAD - RES_PAD + DILATION * k:
                         LPAD - RES_PAD + DILATION * k + Lout, :] for k in range(K)]
        if WIDEN_CONTRACTION:
            # Single (Lout, 3*Cp) @ (3*Cp, Cp) contraction -> full 256x256 MXU on v6e/v7x.
            return jnp.dot(jnp.concatenate(wins, axis=-1), w_ref[...],
                           preferred_element_type=jnp.float32)
        # Chained value accumulation (v5e; also lets v7x accumulate in the MRB).
        acc = jnp.dot(wins[0], w_ref[0:Cp, :], preferred_element_type=jnp.float32)
        for k in range(1, K):
            acc = acc + jnp.dot(wins[k], w_ref[k * Cp:(k + 1) * Cp, :],
                                preferred_element_type=jnp.float32)
        return acc

    # ---------- residual branch: BN1 -> ReLU -> conv1 (+BN2 folded) -> ReLU -> conv2 ----
    a1 = jnp.maximum(pool * s1_ref[...] + t1_ref[...], 0.0)                 # f32 VPU math
    apad_ref[LPAD:LPAD + Lout, :] = a1.astype(apad_ref.dtype)               # one aligned store
    h1 = dilated_conv(w1_ref) + b1_ref[...]                                 # BN2 folded into w1/b1

    a2 = jnp.maximum(h1, 0.0)
    apad_ref[LPAD:LPAD + Lout, :] = a2.astype(apad_ref.dtype)
    out = dilated_conv(w2_ref) + b2_ref[...] + pool                         # + residual skip

    out_ref[0] = out.astype(out_ref.dtype)


def prepare_params(p_torch):
    """One-time weight prep (not per-call activation traffic):
    - pooling conv (Cout, Cin, K) -> im2col matrix (K*Cin, Cp), bf16
    - residual convs (Cout, Cout, K) -> taps stacked along rows (K*Cp, Cp), bf16,
      with the second BatchNorm folded into conv1 (w1*s2, b1*s2 + t2)
    - per-channel vectors zero-padded to Cp lanes, kept in f32 for the VPU math."""
    cout, cin = p_torch['wp'].shape[0], p_torch['wp'].shape[1]
    cp = _round_up(cout, LANES)

    def pad_vec(v):                                   # (Cout,) -> (1, Cp) f32
        return jnp.pad(v, (0, cp - cout)).astype(jnp.float32)[None, :]

    # rows ordered (k, i) to match the wrapper's im2col column order
    wp = jnp.transpose(p_torch['wp'], (2, 1, 0)).reshape(K * cin, cout)
    wp = jnp.pad(wp, ((0, 0), (0, cp - cout))).astype(jnp.bfloat16)

    def res_w(w_torch, out_scale=None):               # (Cout, Cout, K) -> (K*Cp, Cp) bf16
        w = jnp.transpose(w_torch, (2, 1, 0))         # (K, Cin=Cout, Cout)
        if out_scale is not None:
            w = w * out_scale[None, None, :]          # fold BN2 per output channel
        w = jnp.pad(w, ((0, 0), (0, cp - cout), (0, cp - cout)))
        return w.reshape(K * cp, cp).astype(jnp.bfloat16)

    w1 = res_w(p_torch['w1'], out_scale=p_torch['s2'])
    w2 = res_w(p_torch['w2'])
    b1 = pad_vec(p_torch['b1'] * p_torch['s2'] + p_torch['t2'])   # BN2-folded bias

    return dict(wp=wp, bp=pad_vec(p_torch['bp']),
                s1=pad_vec(p_torch['s1']), t1=pad_vec(p_torch['t1']),
                w1=w1, b1=b1,
                w2=w2, b2=pad_vec(p_torch['b2']))


@functools.partial(jax.jit, static_argnames=("cout",))
def conv1d_pooling_block(x_ncl, params, *, cout):
    """x_ncl: (N, Cin, Lin) float32, PyTorch layout. Returns (N, Cout, Lout)."""
    N, Cin, Lin = x_ncl.shape
    KCin = params['wp'].shape[0]
    Cp = params['wp'].shape[-1]
    Lout = (Lin + 2 * POOL_PAD - (K - 1) - 1) // POOL_STRIDE + 1

    # Wrapper glue: NCL -> NLC transpose fused with the pooling-conv im2col slab
    # (handles the stride-2 windows and boundary zero padding outside the kernel).
    x = jnp.transpose(x_ncl, (0, 2, 1))                               # (N, Lin, Cin)
    xp = jnp.pad(x, ((0, 0), (POOL_PAD, POOL_PAD), (0, 0)))           # (N, Lin+2, Cin)
    cols = [xp[:, k: k + POOL_STRIDE * (Lout - 1) + 1: POOL_STRIDE, :] for k in range(K)]
    xcol = jnp.concatenate(cols, axis=-1).astype(jnp.bfloat16)        # (N, Lout, K*Cin)

    vec_spec = pl.BlockSpec((1, Cp), lambda b: (0, 0))
    grid_spec = pltpu.PrefetchScalarGridSpec(
        num_scalar_prefetch=0,
        grid=(N,),                                                    # one batch row per step
        in_specs=[
            pl.BlockSpec((1, Lout, KCin), lambda b: (b, 0, 0)),       # x im2col slab
            pl.BlockSpec((KCin, Cp), lambda b: (0, 0)),               # wp
            vec_spec,                                                 # bp
            vec_spec, vec_spec,                                       # s1, t1
            pl.BlockSpec((K * Cp, Cp), lambda b: (0, 0)),             # w1 (BN2 folded)
            vec_spec,                                                 # b1 (BN2 folded)
            pl.BlockSpec((K * Cp, Cp), lambda b: (0, 0)),             # w2
            vec_spec,                                                 # b2
        ],
        out_specs=pl.BlockSpec((1, Lout, Cp), lambda b: (b, 0, 0)),
        scratch_shapes=[pltpu.VMEM((Lout + 2 * LPAD, Cp), jnp.bfloat16)],  # padded activations
    )
    out = pl.pallas_call(
        _pooling_block_kernel,
        out_shape=jax.ShapeDtypeStruct((N, Lout, Cp), jnp.float32),
        grid_spec=grid_spec,
        compiler_params=pltpu.CompilerParams(dimension_semantics=("parallel",)),
    )(xcol, params['wp'], params['bp'],
      params['s1'], params['t1'], params['w1'], params['b1'],
      params['w2'], params['b2'])

    # glue: drop lane padding, return PyTorch NCL layout.
    return jnp.transpose(out[:, :, :cout], (0, 2, 1))


# ---------------------------- pure-JAX reference ----------------------------
def reference_forward(x_ncl, p_torch):
    def conv1d(x, w_oik, b, stride, dilation, padding):
        y = jax.lax.conv_general_dilated(
            x, w_oik, window_strides=(stride,), padding=[(padding, padding)],
            rhs_dilation=(dilation,), dimension_numbers=('NCH', 'OIH', 'NCH'))
        return y + b[None, :, None]

    pool = conv1d(x_ncl, p_torch['wp'], p_torch['bp'], POOL_STRIDE, 1, POOL_PAD)
    h = jnp.maximum(pool * p_torch['s1'][None, :, None] + p_torch['t1'][None, :, None], 0.0)
    h = conv1d(h, p_torch['w1'], p_torch['b1'], 1, DILATION, RES_PAD)
    h = jnp.maximum(h * p_torch['s2'][None, :, None] + p_torch['t2'][None, :, None], 0.0)
    h = conv1d(h, p_torch['w2'], p_torch['b2'], 1, DILATION, RES_PAD)
    return h + pool


if __name__ == "__main__":
    key = jax.random.PRNGKey(0)
    N, Cin, Cout = 2, 4, 64

    ks = jax.random.split(key, 16)
    # PyTorch-layout conv weights (Cout, Cin, K)
    wp = 0.1 * jax.random.normal(ks[0], (Cout, Cin, K), jnp.float32)
    bp = 0.1 * jax.random.normal(ks[1], (Cout,), jnp.float32)
    w1 = 0.1 * jax.random.normal(ks[2], (Cout, Cout, K), jnp.float32)
    b1 = 0.1 * jax.random.normal(ks[3], (Cout,), jnp.float32)
    w2 = 0.1 * jax.random.normal(ks[4], (Cout, Cout, K), jnp.float32)
    b2 = 0.1 * jax.random.normal(ks[5], (Cout,), jnp.float32)

    # BatchNorm1d parameters (eval mode), folded to per-channel scale/shift
    def bn_fold(kg, kb, km, kv):
        gamma = 1.0 + 0.1 * jax.random.normal(kg, (Cout,), jnp.float32)
        beta = 0.1 * jax.random.normal(kb, (Cout,), jnp.float32)
        mean = 0.1 * jax.random.normal(km, (Cout,), jnp.float32)
        var = jax.random.uniform(kv, (Cout,), jnp.float32, 0.5, 1.5)
        scale = gamma / jnp.sqrt(var + 1e-5)
        shift = beta - mean * scale
        return scale, shift

    s1, t1 = bn_fold(ks[6], ks[7], ks[8], ks[9])
    s2, t2 = bn_fold(ks[10], ks[11], ks[12], ks[13])

    p_torch = dict(wp=wp, bp=bp, w1=w1, b1=b1, w2=w2, b2=b2,
                   s1=s1, t1=t1, s2=s2, t2=t2)
    p_kernel = prepare_params(p_torch)

    for Lin in (16, 17):   # even + odd lengths (odd exercises the boundary handling)
        x = jax.random.normal(ks[14], (N, Cin, Lin), jnp.float32)
        out = jax.block_until_ready(conv1d_pooling_block(x, p_kernel, cout=Cout))
        ref = jax.block_until_ready(reference_forward(x, p_torch))
        assert out.shape == ref.shape, (out.shape, ref.shape)
        err = float(jnp.abs(out - ref).max())
        # bf16 MXU operands vs f32 reference -> loosened tolerance
        assert jnp.allclose(out, ref, rtol=5e-2, atol=5e-2), err

    print("KERNEL_OK")
</pallas_src>

<mosaic_0001>
module attributes {stable_mosaic.version = 11 : i64} {
  func.func @_pooling_block_kernel(%arg0: i32, %arg1: memref<1x8x12xbf16, #tpu.memory_space<vmem>>, %arg2: memref<12x128xbf16, #tpu.memory_space<vmem>>, %arg3: memref<1x128xf32, #tpu.memory_space<vmem>>, %arg4: memref<1x128xf32, #tpu.memory_space<vmem>>, %arg5: memref<1x128xf32, #tpu.memory_space<vmem>>, %arg6: memref<384x128xbf16, #tpu.memory_space<vmem>>, %arg7: memref<1x128xf32, #tpu.memory_space<vmem>>, %arg8: memref<384x128xbf16, #tpu.memory_space<vmem>>, %arg9: memref<1x128xf32, #tpu.memory_space<vmem>>, %arg10: memref<1x8x128xf32, #tpu.memory_space<vmem>>, %arg11: memref<24x128xbf16, #tpu.memory_space<vmem>>) attributes {dimension_semantics = [#tpu.dimension_semantics<parallel>], iteration_bounds = array<i64: 2>, scalar_prefetch = 0 : i64, scratch_operands = 1 : i64, tpu.core_type = #tpu.core_type<tc>, window_params = [{transform_indices = @transform_0, window_bounds = array<i64: 1, 8, 12>}, {pipeline_mode = #tpu.pipeline_mode<synchronous>, transform_indices = @transform_1, window_bounds = array<i64: 12, 128>}, {pipeline_mode = #tpu.pipeline_mode<synchronous>, transform_indices = @transform_2, window_bounds = array<i64: 1, 128>}, {pipeline_mode = #tpu.pipeline_mode<synchronous>, transform_indices = @transform_3, window_bounds = array<i64: 1, 128>}, {pipeline_mode = #tpu.pipeline_mode<synchronous>, transform_indices = @transform_4, window_bounds = array<i64: 1, 128>}, {pipeline_mode = #tpu.pipeline_mode<synchronous>, transform_indices = @transform_5, window_bounds = array<i64: 384, 128>}, {pipeline_mode = #tpu.pipeline_mode<synchronous>, transform_indices = @transform_6, window_bounds = array<i64: 1, 128>}, {pipeline_mode = #tpu.pipeline_mode<synchronous>, transform_indices = @transform_7, window_bounds = array<i64: 384, 128>}, {pipeline_mode = #tpu.pipeline_mode<synchronous>, transform_indices = @transform_8, window_bounds = array<i64: 1, 128>}, {transform_indices = @transform_9, window_bounds = array<i64: 1, 8, 128>}]} {
    %cst = arith.constant 0.000000e+00 : bf16
    %0 = vector.broadcast %cst : bf16 to vector<2x128xbf16>
    %c6 = arith.constant 6 : index
    %c0 = arith.constant 0 : index
    %1 = vector.load %arg11[%c6, %c0] : memref<24x128xbf16, #tpu.memory_space<vmem>>, vector<2x128xbf16>
    tpu.vector_store %arg11[%c6, %c0], %0 {strides = array<i32>} : memref<24x128xbf16, #tpu.memory_space<vmem>>, vector<2x128xbf16>,
    %cst_0 = arith.constant 0.000000e+00 : bf16
    %2 = vector.broadcast %cst_0 : bf16 to vector<2x128xbf16>
    %c16 = arith.constant 16 : index
    %c0_1 = arith.constant 0 : index
    %3 = vector.load %arg11[%c16, %c0_1] : memref<24x128xbf16, #tpu.memory_space<vmem>>, vector<2x128xbf16>
    tpu.vector_store %arg11[%c16, %c0_1], %2 {strides = array<i32>} : memref<24x128xbf16, #tpu.memory_space<vmem>>, vector<2x128xbf16>,
    %c0_2 = arith.constant 0 : index
    %c0_3 = arith.constant 0 : index
    %c0_4 = arith.constant 0 : index
    %4 = vector.load %arg1[%c0_2, %c0_3, %c0_4] : memref<1x8x12xbf16, #tpu.memory_space<vmem>>, vector<1x8x12xbf16>
    %5 = vector.shape_cast %4 : vector<1x8x12xbf16> to vector<8x12xbf16>
    %c0_5 = arith.constant 0 : index
    %c0_6 = arith.constant 0 : index
    %6 = vector.load %arg2[%c0_5, %c0_6] : memref<12x128xbf16, #tpu.memory_space<vmem>>, vector<12x128xbf16>
    %cst_7 = arith.constant dense<0.000000e+00> : vector<8x128xf32>
    %7 = tpu.matmul %5, %6, %cst_7 {dimension_numbers = #tpu.dot_dimension_numbers<[1], [0], [0], [1], [0, 0, 1, 1], [], []>} : vector<8x12xbf16>, vector<12x128xbf16>, vector<8x128xf32> -> vector<8x128xf32>
    %c0_8 = arith.constant 0 : index
    %c0_9 = arith.constant 0 : index
    %8 = vector.load %arg3[%c0_8, %c0_9] : memref<1x128xf32, #tpu.memory_space<vmem>>, vector<1x128xf32>
    %9 = vector.broadcast %8 : vector<1x128xf32> to vector<8x128xf32>
    %10 = arith.addf %7, %9 : vector<8x128xf32>
    %c0_10 = arith.constant 0 : index
    %c0_11 = arith.constant 0 : index
    %11 = vector.load %arg4[%c0_10, %c0_11] : memref<1x128xf32, #tpu.memory_space<vmem>>, vector<1x128xf32>
    %12 = vector.broadcast %11 : vector<1x128xf32> to vector<8x128xf32>
    %13 = arith.mulf %10, %12 : vector<8x128xf32>
    %c0_12 = arith.constant 0 : index
    %c0_13 = arith.constant 0 : index
    %14 = vector.load %arg5[%c0_12, %c0_13] : memref<1x128xf32, #tpu.memory_space<vmem>>, vector<1x128xf32>
    %15 = vector.broadcast %14 : vector<1x128xf32> to vector<8x128xf32>
    %16 = arith.addf %13, %15 : vector<8x128xf32>
    %cst_14 = arith.constant 0.000000e+00 : f32
    %17 = vector.broadcast %cst_14 : f32 to vector<8x128xf32>
    %18 = arith.maximumf %16, %17 : vector<8x128xf32>
    %19 = arith.truncf %18 : vector<8x128xf32> to vector<8x128xbf16>
    %c8 = arith.constant 8 : index
    %c0_15 = arith.constant 0 : index
    %20 = vector.load %arg11[%c8, %c0_15] : memref<24x128xbf16, #tpu.memory_space<vmem>>, vector<8x128xbf16>
    tpu.vector_store %arg11[%c8, %c0_15], %19 {strides = array<i32>} : memref<24x128xbf16, #tpu.memory_space<vmem>>, vector<8x128xbf16>,
    %c6_16 = arith.constant 6 : index
    %c0_17 = arith.constant 0 : index
    %21 = vector.load %arg11[%c6_16, %c0_17] : memref<24x128xbf16, #tpu.memory_space<vmem>>, vector<8x128xbf16>
    %c8_18 = arith.constant 8 : index
    %c0_19 = arith.constant 0 : index
    %22 = vector.load %arg11[%c8_18, %c0_19] : memref<24x128xbf16, #tpu.memory_space<vmem>>, vector<8x128xbf16>
    %c10 = arith.constant 10 : index
    %c0_20 = arith.constant 0 : index
    %23 = vector.load %arg11[%c10, %c0_20] : memref<24x128xbf16, #tpu.memory_space<vmem>>, vector<8x128xbf16>
    %24 = tpu.concatenate %21, %22, %23 in 1 : vector<8x128xbf16>, vector<8x128xbf16>, vector<8x128xbf16> -> vector<8x384xbf16>
    %c0_21 = arith.constant 0 : index
    %c0_22 = arith.constant 0 : index
    %25 = vector.load %arg6[%c0_21, %c0_22] : memref<384x128xbf16, #tpu.memory_space<vmem>>, vector<384x128xbf16>
    %cst_23 = arith.constant dense<0.000000e+00> : vector<8x128xf32>
    %26 = tpu.matmul %24, %25, %cst_23 {dimension_numbers = #tpu.dot_dimension_numbers<[1], [0], [0], [1], [0, 0, 1, 1], [], []>} : vector<8x384xbf16>, vector<384x128xbf16>, vector<8x128xf32> -> vector<8x128xf32>
    %c0_24 = arith.constant 0 : index
    %c0_25 = arith.constant 0 : index
    %27 = vector.load %arg7[%c0_24, %c0_25] : memref<1x128xf32, #tpu.memory_space<vmem>>, vector<1x128xf32>
    %28 = vector.broadcast %27 : vector<1x128xf32> to vector<8x128xf32>
    %29 = arith.addf %26, %28 : vector<8x128xf32>
    %cst_26 = arith.constant 0.000000e+00 : f32
    %30 = vector.broadcast %cst_26 : f32 to vector<8x128xf32>
    %31 = arith.maximumf %29, %30 : vector<8x128xf32>
    %32 = arith.truncf %31 : vector<8x128xf32> to vector<8x128xbf16>
    %c8_27 = arith.constant 8 : index
    %c0_28 = arith.constant 0 : index
    %33 = vector.load %arg11[%c8_27, %c0_28] : memref<24x128xbf16, #tpu.memory_space<vmem>>, vector<8x128xbf16>
    tpu.vector_store %arg11[%c8_27, %c0_28], %32 {strides = array<i32>} : memref<24x128xbf16, #tpu.memory_space<vmem>>, vector<8x128xbf16>,
    %c6_29 = arith.constant 6 : index
    %c0_30 = arith.constant 0 : index
    %34 = vector.load %arg11[%c6_29, %c0_30] : memref<24x128xbf16, #tpu.memory_space<vmem>>, vector<8x128xbf16>
    %c8_31 = arith.constant 8 : index
    %c0_32 = arith.constant 0 : index
    %35 = vector.load %arg11[%c8_31, %c0_32] : memref<24x128xbf16, #tpu.memory_space<vmem>>, vector<8x128xbf16>
    %c10_33 = arith.constant 10 : index
    %c0_34 = arith.constant 0 : index
    %36 = vector.load %arg11[%c10_33, %c0_34] : memref<24x128xbf16, #tpu.memory_space<vmem>>, vector<8x128xbf16>
    %37 = tpu.concatenate %34, %35, %36 in 1 : vector<8x128xbf16>, vector<8x128xbf16>, vector<8x128xbf16> -> vector<8x384xbf16>
    %c0_35 = arith.constant 0 : index
    %c0_36 = arith.constant 0 : index
    %38 = vector.load %arg8[%c0_35, %c0_36] : memref<384x128xbf16, #tpu.memory_space<vmem>>, vector<384x128xbf16>
    %cst_37 = arith.constant dense<0.000000e+00> : vector<8x128xf32>
    %39 = tpu.matmul %37, %38, %cst_37 {dimension_numbers = #tpu.dot_dimension_numbers<[1], [0], [0], [1], [0, 0, 1, 1], [], []>} : vector<8x384xbf16>, vector<384x128xbf16>, vector<8x128xf32> -> vector<8x128xf32>
    %c0_38 = arith.constant 0 : index
    %c0_39 = arith.constant 0 : index
    %40 = vector.load %arg9[%c0_38, %c0_39] : memref<1x128xf32, #tpu.memory_space<vmem>>, vector<1x128xf32>
    %41 = vector.broadcast %40 : vector<1x128xf32> to vector<8x128xf32>
    %42 = arith.addf %39, %41 : vector<8x128xf32>
    %43 = arith.addf %42, %10 : vector<8x128xf32>
    %c0_40 = arith.constant 0 : index
    %c0_41 = arith.constant 0 : index
    %c0_42 = arith.constant 0 : index
    %44 = vector.load %arg10[%c0_40, %c0_41, %c0_42] : memref<1x8x128xf32, #tpu.memory_space<vmem>>, vector<1x8x128xf32>
    %45 = vector.shape_cast %44 : vector<1x8x128xf32> to vector<8x128xf32>
    %46 = vector.shape_cast %43 : vector<8x128xf32> to vector<1x8x128xf32>
    tpu.vector_store %arg10[%c0_40, %c0_41, %c0_42], %46 {strides = array<i32>} : memref<1x8x128xf32, #tpu.memory_space<vmem>>, vector<1x8x128xf32>,
    return
  }
  func.func @transform_0(%arg0: i32) -> (i32, i32, i32) {
    %c0_i32 = arith.constant 0 : i32
    %c0_i32_0 = arith.constant 0 : i32
    %c0_i32_1 = arith.constant 0 : i32
    return %arg0, %c0_i32, %c0_i32_0 : i32, i32, i32
  }
  func.func @transform_1(%arg0: i32) -> (i32, i32) {
    %c0_i32 = arith.constant 0 : i32
    %c0_i32_0 = arith.constant 0 : i32
    %c0_i32_1 = arith.constant 0 : i32
    return %c0_i32, %c0_i32_0 : i32, i32
  }
  func.func @transform_2(%arg0: i32) -> (i32, i32) {
    %c0_i32 = arith.constant 0 : i32
    %c0_i32_0 = arith.constant 0 : i32
    %c0_i32_1 = arith.constant 0 : i32
    return %c0_i32, %c0_i32_0 : i32, i32
  }
  func.func @transform_3(%arg0: i32) -> (i32, i32) {
    %c0_i32 = arith.constant 0 : i32
    %c0_i32_0 = arith.constant 0 : i32
    %c0_i32_1 = arith.constant 0 : i32
    return %c0_i32, %c0_i32_0 : i32, i32
  }
  func.func @transform_4(%arg0: i32) -> (i32, i32) {
    %c0_i32 = arith.constant 0 : i32
    %c0_i32_0 = arith.constant 0 : i32
    %c0_i32_1 = arith.constant 0 : i32
    return %c0_i32, %c0_i32_0 : i32, i32
  }
  func.func @transform_5(%arg0: i32) -> (i32, i32) {
    %c0_i32 = arith.constant 0 : i32
    %c0_i32_0 = arith.constant 0 : i32
    %c0_i32_1 = arith.constant 0 : i32
    return %c0_i32, %c0_i32_0 : i32, i32
  }
  func.func @transform_6(%arg0: i32) -> (i32, i32) {
    %c0_i32 = arith.constant 0 : i32
    %c0_i32_0 = arith.constant 0 : i32
    %c0_i32_1 = arith.constant 0 : i32
    return %c0_i32, %c0_i32_0 : i32, i32
  }
  func.func @transform_7(%arg0: i32) -> (i32, i32) {
    %c0_i32 = arith.constant 0 : i32
    %c0_i32_0 = arith.constant 0 : i32
    %c0_i32_1 = arith.constant 0 : i32
    return %c0_i32, %c0_i32_0 : i32, i32
  }
  func.func @transform_8(%arg0: i32) -> (i32, i32) {
    %c0_i32 = arith.constant 0 : i32
    %c0_i32_0 = arith.constant 0 : i32
    %c0_i32_1 = arith.constant 0 : i32
    return %c0_i32, %c0_i32_0 : i32, i32
  }
  func.func @transform_9(%arg0: i32) -> (i32, i32, i32) {
    %c0_i32 = arith.constant 0 : i32
    %c0_i32_0 = arith.constant 0 : i32
    %c0_i32_1 = arith.constant 0 : i32
    return %arg0, %c0_i32, %c0_i32_0 : i32, i32, i32
  }
}

</mosaic_0001>

<bundles_post_ra>
// kernel: conv1d_pooling_block.1
= control target key start
LH: loop header
LB: loop body
LE: loop exit
PB: predicated region body
PF: predicated region fallthrough
CT: control target
= control target key end

     0   :  { %14 = vsyncpa [#allocation4], 0  ;;  %s1681_s0 = inlined_call_operand.vmem [shape: bf16[2,8,12], index: 0, kind: input, shape index: {}]   ;;  %s1682_s1 = inlined_call_operand.vmem [shape: bf16[12,128], index: 1, kind: input, shape index: {}]   ;;  %s1683_s2 = inlined_call_operand.vmem [shape: f32[1,128], index: 2, kind: input, shape index: {}]   ;;  %s1684_s3 = inlined_call_operand.vmem [shape: f32[1,128], index: 3, kind: input, shape index: {}]   ;;  %s1685_s4 = inlined_call_operand.vmem [shape: f32[1,128], index: 4, kind: input, shape index: {}]   ;;  %s1686_s5 = inlined_call_operand.hbm [shape: bf16[384,128], index: 5, kind: input, shape index: {}]   ;;  %s1687_s6 = inlined_call_operand.vmem [shape: f32[1,128], index: 6, kind: input, shape index: {}]   ;;  %s1688_s7 = inlined_call_operand.hbm [shape: bf16[384,128], index: 7, kind: input, shape index: {}]   ;;  %s1689_s8 = inlined_call_operand.vmem [shape: f32[1,128], index: 8, kind: input, shape index: {}]   ;;  %s1690_s9 = inlined_call_operand.vmem [shape: f32[2,8,128], index: 9, kind: output, shape index: {}]  }
   0x1   :  { %15 = vsyncpa [#allocation6], 0  ;;  %s1539_s30 = smov 0  }
   0x2 LB: > { %s1545_s10 = sadd.s32 4294967295, %s1480_s30   ;;  %p1135_p0 = scmp.ge.s32.totalorder %s1480_s30, 1  ;;  %s1480_s30 = sphi %s1539_s30, %s21_s30  }
   0x3   : > { %p246_p1 = scmp.lt.s32.totalorder %s1480_s30, 3  ;;  %s1482_s11 = smov [#allocation3]  }
   0x4   : > { %s270_s12 = sshll.u32 %s1482_s11, 4  ;;  %p1691_p3 = scmp.eq.s32.totalorder %s1545_s10, 0  ;;  %s271_s12 = int_to_ptr.vmem [resolvable:$true] %s270_s12 }
   0x5   : > { %p1549_p2 = pnand %p1135_p0, %p246_p1  ;;  %s1483_s14 = smov [#allocation5]  }
   0x6   : > { %s286_s15 = sshll.u32 %s1483_s14, 4  ;;  %s1410_s19 = scalar_lea.hbm %s1686_s5, 3072  ;;  %s1562_s15 = int_to_ptr.vmem [resolvable:$true] %s286_s15 }
   0x7   : > { %s1693_s13 = scalar_select %p1549_p2, 1, 0 }
   0x8   : > { %p1329_p4 = pneg %p1549_p2  ;;  %p1411_p6 = scmp.ne.s32.totalorder %s1686_s5, %s1410_s19 }
   0x9   : > { %p1417_p10 = scmp.lt.u32.totalorder %s1410_s19, %s1686_s5 }
   0xa   : > { %p1558_p5 = pnand %p1691_p3, %p1329_p4 }
   0xc   : > { %p1412_p7 = pneg %p1558_p5 }
   0xe   : > { %p1413_p8 = pnand %p1412_p7, %p1411_p6 }
  0x10   : > { %p1414_p9 = pneg %p1413_p8 }
  0x12   : > { %p1419_p11 = pnand %p1417_p10, %p1414_p9 }
  0x14   : > { %1422 = shalt.err (!%p1419_p11)
}
  0x15   : > { %s1423_s24 = scalar_lea.vmem %s271_s12, 3072  ;;  %p1431_p1 = scmp.lt.s32.totalorder %s271_s12, %s271_s12 }
  0x16   : > { %p1424_p12 = scmp.ne.s32.totalorder %s271_s12, %s1423_s24  ;;  %p1432_p4 = scmp.lt.s32.totalorder %s1423_s24, %s1423_s24 }
  0x18   : > { %p1426_p13 = pnand %p1424_p12, %p1412_p7  ;;  %p1433_p3 = por %p1432_p4, %p1431_p1 }
  0x1a   : > { %p1427_p0 = pneg %p1426_p13 }
  0x1c   : > { %p1434_p2 = pnand %p1433_p3, %p1427_p0 }
  0x1e   : > { %1437 = shalt.err (!%p1434_p2)
}
  0x1f   : > { %s1484_s25 = smov 64   ;;  %s1485_s26 = smov 4  }
  0x20   : > { %1332 = dma.hbm_to_vmem [thread:$0]  (!%p1558_p5), %s1686_s5, 3072, %s271_s12, [#allocation4], %s1484_s25, %s1484_s25, %s1485_s26  }
  0x21   : > { %s1438_s14 = scalar_lea.hbm %s1688_s7, 3072 }
  0x22   : > { %p1439_p6 = scmp.ne.s32.totalorder %s1688_s7, %s1438_s14  ;;  %p1445_p8 = scmp.lt.u32.totalorder %s1438_s14, %s1688_s7 }
  0x24   : > { %p1441_p2 = pnand %p1439_p6, %p1412_p7 }
  0x26   : > { %p1442_p3 = pneg %p1441_p2 }
  0x28   : > { %p1447_p9 = pnand %p1445_p8, %p1442_p3 }
  0x2a   : > { %1450 = shalt.err (!%p1447_p9)
}
  0x2b   : > { %s1451_s12 = scalar_lea.vmem %s1562_s15, 3072  ;;  %p1459_p13 = scmp.lt.s32.totalorder %s1562_s15, %s1562_s15 }
  0x2c   : > { %p1452_p10 = scmp.ne.s32.totalorder %s1562_s15, %s1451_s12  ;;  %p1460_p0 = scmp.lt.s32.totalorder %s1451_s12, %s1451_s12 }
  0x2e   : > { %p1454_p11 = pnand %p1452_p10, %p1412_p7  ;;  %p1461_p1 = por %p1460_p0, %p1459_p13 }
  0x30   : > { %p1455_p12 = pneg %p1454_p11 }
  0x32   : > { %p1462_p4 = pnand %p1461_p1, %p1455_p12 }
  0x34   : > { %1465 = shalt.err (!%p1462_p4)
}
  0x35   : > { %1335 = dma.hbm_to_vmem [thread:$0]  (!%p1558_p5), %s1688_s7, 3072, %s1562_s15, [#allocation6], %s1484_s25, %s1484_s25, %s1485_s26  }
  0x36   : > { %p1695_p6 = scmp.ne.s32.totalorder %s1693_s13, 0 }
  0x37   : > { %p1696_p2 = scmp.eq.s32.totalorder (!%p1695_p6), %s1545_s10, 0 }
  0x38   : > { %312 = sbr.rel (%p1695_p6) target bundleno = 762 (0x2fa), region = 56 }
  0x3f   : > { %1471 = dma.done.wait (%p1696_p2), [#allocation4], 3072   ;;  %p1697_p7 = pmov %p1696_p2 }
  0x40   : > { %p1698_p3 = pmov %p1696_p2 }
  0x41   : > { %1473 = vsyncadd (%p1697_p7), [#allocation4], 4294964224 }
  0x42   : > { %1475 = dma.done.wait (%p1698_p3), [#allocation6], 3072   ;;  %p1699_p8 = pmov %p1696_p2 }
  0x43   : > { %p350_p9 = scmp.lt.s32.totalorder %s1545_s10, 1  ;;  %v1486_v0 = vmov 0.0   ;;  %vm1487_vm0 = vmmov 0   ;;  %vm380_vm1 = vcmask 1045504   ;;  %v1355_v1 = vld [vmem:[%s1682_s1] sm:$0x3f]  }
  0x44   : > { %1477 = vsyncadd (%p1699_p8), [#allocation6], 4294964224  ;;  %1275 = vmatprep.subr.bf16.mxu0 %v1486_v0  ;;  %1277 = vmatprep.mubr.msk.bf16.mxu0 %vm1487_vm0, %v1486_v0  ;;  %v382_v3 = vsel %vm380_vm1, %v1355_v1, 0  ;;  %v1356_v4 = vld [vmem:[#allocation3 + $0x40] sm:$0xff]   ;;  %vm376_vm2 = vcmask 97280   ;;  %v1359_v7 = vld [vmem:[#allocation3 + $0x48] sm:$0xff]  }
  0x45   : > { %s1701_s10 = smov (!%p350_p9, %s1545_s10), 1  ;;  %1276 = vmatpush3.bf16.msra.mxu0 %v382_v3  ;;  %v1357_v5 = vld [vmem:[#allocation3] sm:$0xff]   ;;  %1213 = vmatprep.subr.bf16.mxu1 %v1356_v4  ;;  %v1360_v8 = vld [vmem:[#allocation3 + $0x8] sm:$0xff]   ;;  %v1362_v10 = vld [vmem:[#allocation3 + $0x50] sm:$0xff]   ;;  %v1488_v25 = vmov 0  }
  0x46   : > { %s1142_s13 = sshll.u32 %s1701_s10, 2  ;;  %1281 = vmatprep.subr.bf16.mxu0 %v1486_v0  ;;  %v1358_v6 = vld [vmem:[#allocation3 + $0x80] sm:$0xff]   ;;  %1214 = vmatpush3.bf16.msra.mxu1 %v1357_v5  ;;  %v1361_v9 = vld [vmem:[#allocation3 + $0x88] sm:$0xff]   ;;  %v1363_v11 = vld [vmem:[#allocation3 + $0x10] sm:$0xff]   ;;  %359 = vst [vmem:[#allocation2] sm:$0x8] %v1488_v25 }
  0x47   : > { %s353_s23 = scalar_lea.vmem %s1681_s0, %s1142_s13  ;;  %1215 = vmatprep.subr.bf16.mxu1 %v1359_v7  ;;  %v1364_v12 = vld [vmem:[#allocation3 + $0x90] sm:$0xff]   ;;  %v1365_v13 = vld [vmem:[#allocation3 + $0x58] sm:$0xff]   ;;  %v1368_v16 = vld [vmem:[#allocation3 + $0x60] sm:$0xff]   ;;  %360 = vst [vmem:[#allocation2 + $0x8] sm:$0x1] %v1488_v25  ;;  %s1143_s12 = sshll.u32 %s1701_s10, 3 }
  0x48   : > { %v361_v2 = vld [vmem:[%s353_s23] sm:$0xf]  ;;  %v1366_v14 = vld [vmem:[#allocation3 + $0x18] sm:$0xff]   ;;  %v1369_v17 = vld [vmem:[#allocation3 + $0x20] sm:$0xff]   ;;  %s357_s13 = scalar_lea.vmem %s1690_s9, %s1143_s12 }
  0x49   : > { %1278 = vmatmul.mubr.msk.bf16.vlgmr.msra.gmra.mrb[0].mxu0 %vm376_vm2, %v361_v2  ;;  %v1367_v15 = vld [vmem:[#allocation3 + $0x98] sm:$0xff]   ;;  %v1370_v18 = vld [vmem:[#allocation3 + $0xa0] sm:$0xff]   ;;  %v1371_v19 = vld [vmem:[#allocation3 + $0x68] sm:$0xff]  }
  0x4a   : > { %1282 = vmatpush3.bf16.msra.mxu0 %v1358_v6  ;;  %1297 = vmatprep.mubr.msk.bf16.mxu0 %vm1487_vm0, %v1486_v0  ;;  %v1372_v20 = vld [vmem:[#allocation3 + $0x28] sm:$0xff]   ;;  %v1374_v22 = vld [vmem:[#allocation3 + $0x70] sm:$0xff]   ;;  %v1377_v26 = vld [vmem:[#allocation3 + $0x78] sm:$0xff]  }
  0x4b   : > { %1283 = vmatprep.subr.bf16.mxu0 %v1486_v0  ;;  %1216 = vmatpush3.bf16.msra.mxu1 %v1360_v8  ;;  %v1373_v21 = vld [vmem:[#allocation3 + $0xa8] sm:$0xff]   ;;  %v1375_v23 = vld [vmem:[#allocation3 + $0x30] sm:$0xff]   ;;  %v1378_v27 = vld [vmem:[#allocation3 + $0x38] sm:$0xff]  }
  0x4c   : > { %1217 = vmatprep.subr.bf16.mxu1 %v1362_v10  ;;  %v1376_v24 = vld [vmem:[#allocation3 + $0xb0] sm:$0xff]   ;;  %v1379_v28 = vld [vmem:[#allocation3 + $0xb8] sm:$0xff]   ;;  %v1383_v29 = vld [vmem:[#allocation5 + $0x40] sm:$0xff]  }
  0x4d   : > { %v1144_v30 = vld [vmem:[%s1683_s2] ss:$0 sm:$0xff]  ;;  %v1384_v45 = vld [vmem:[#allocation5] sm:$0xff]   ;;  %v1386_v49 = vld [vmem:[#allocation5 + $0x48] sm:$0xff]  }
  0x4e   : > { %1284 = vmatpush3.bf16.msra.mxu0 %v1361_v9  ;;  %v1147_v32 = vld [vmem:[%s1684_s3] ss:$0 sm:$0xff]  ;;  %v1385_v46 = vld [vmem:[#allocation5 + $0x80] sm:$0xff]   ;;  %v1387_v50 = vld [vmem:[#allocation5 + $0x8] sm:$0xff]  }
  0x4f   : > { %1285 = vmatprep.subr.bf16.mxu0 %v1486_v0  ;;  %1218 = vmatpush3.bf16.msra.mxu1 %v1363_v11  ;;  %v1148_v35 = vld [vmem:[%s1685_s4] ss:$0 sm:$0xff]  ;;  %v1388_v51 = vld [vmem:[#allocation5 + $0x88] sm:$0xff]   ;;  %v1392_v55 = vld [vmem:[#allocation5 + $0x58] sm:$0xff]  }
  0x50   : > { %1219 = vmatprep.subr.bf16.mxu1 %v1365_v13  ;;  %v1389_v52 = vld [vmem:[#allocation5 + $0x50] sm:$0xff]   ;;  %v1393_v56 = vld [vmem:[#allocation5 + $0x18] sm:$0xff]   ;;  %v1395_v58 = vld [vmem:[#allocation5 + $0x60] sm:$0xff]  }
  0x51   : > { %v1390_v53 = vld [vmem:[#allocation5 + $0x10] sm:$0xff]   ;;  %v1394_v57 = vld [vmem:[#allocation5 + $0x98] sm:$0xff]   ;;  %v1396_v59 = vld [vmem:[#allocation5 + $0x20] sm:$0xff]  }
  0x52   : > { %1286 = vmatpush3.bf16.msra.mxu0 %v1364_v12  ;;  %v1391_v54 = vld [vmem:[#allocation5 + $0x90] sm:$0xff]   ;;  %v1397_v60 = vld [vmem:[#allocation5 + $0xa0] sm:$0xff]   ;;  %v1398_v61 = vld [vmem:[#allocation5 + $0x68] sm:$0xff]  }
  0x53   : > { %1287 = vmatprep.subr.bf16.mxu0 %v1486_v0  ;;  %1220 = vmatpush3.bf16.msra.mxu1 %v1366_v14  ;;  %v1399_v62 = vld [vmem:[#allocation5 + $0x28] sm:$0xff]   ;;  %v1401_v1 = vld [vmem:[#allocation5 + $0x70] sm:$0xff]   ;;  %v1404_v4 = vld [vmem:[#allocation5 + $0x78] sm:$0xff]  }
  0x54   : > { %1221 = vmatprep.subr.bf16.mxu1 %v1368_v16  ;;  %v1400_v63 = vld [vmem:[#allocation5 + $0xa8] sm:$0xff]   ;;  %v1402_v2 = vld [vmem:[#allocation5 + $0x30] sm:$0xff]   ;;  %v1405_v5 = vld [vmem:[#allocation5 + $0x38] sm:$0xff]  }
  0x55   : > { %v1403_v3 = vld [vmem:[#allocation5 + $0xb0] sm:$0xff]   ;;  %v1406_v6 = vld [vmem:[#allocation5 + $0xb8] sm:$0xff]  }
  0x56   : > { %1288 = vmatpush3.bf16.msra.mxu0 %v1367_v15  ;;  %v1152_v9 = vld [vmem:[%s1687_s6] ss:$0 sm:$0xff] }
  0x57   : > { %1289 = vmatprep.subr.bf16.mxu0 %v1486_v0  ;;  %1222 = vmatpush3.bf16.msra.mxu1 %v1369_v17 }
  0x58   : > { %1223 = vmatprep.subr.bf16.mxu1 %v1371_v19 }
  0x5a   : > { %1290 = vmatpush3.bf16.msra.mxu0 %v1370_v18 }
  0x5b   : > { %1291 = vmatprep.subr.bf16.mxu0 %v1486_v0  ;;  %1224 = vmatpush3.bf16.msra.mxu1 %v1372_v20 }
  0x5c   : > { %1225 = vmatprep.subr.bf16.mxu1 %v1374_v22 }
  0x5e   : > { %1292 = vmatpush3.bf16.msra.mxu0 %v1373_v21 }
  0x5f   : > { %1293 = vmatprep.subr.bf16.mxu0 %v1486_v0  ;;  %1226 = vmatpush3.bf16.msra.mxu1 %v1375_v23 }
  0x60   : > { %1227 = vmatprep.subr.bf16.mxu1 %v1377_v26 }
  0x62   : > { %1294 = vmatpush3.bf16.msra.mxu0 %v1376_v24 }
  0x63   : > { %1295 = vmatprep.subr.bf16.mxu0 %v1486_v0  ;;  %1228 = vmatpush3.bf16.msra.mxu1 %v1378_v27  ;;  %v1182_v27 = vld [vmem:[%s1689_s8] ss:$0 sm:$0xff] }
  0x64   : > { %1244 = vmatprep.subr.bf16.mxu1 %v1383_v29 }
  0x66   : > { %1296 = vmatpush3.bf16.msra.mxu0 %v1379_v28 }
  0x67   : > { %1301 = vmatprep.subr.bf16.mxu0 %v1486_v0 }
 0x11c   : > { %v418_v31 = vpop.f32.mrb[0].mxu0 }
 0x11d   : > { %v1652_v33 = vadd.f32 %v1144_v30, %v418_v31  ;;  %v1279_v34 = vpop.f32.mrb[1].mxu0 }
 0x11e   : > { %v421_v36 = vpop.f32.mrb[2].mxu0 }
 0x11f   : > { %v431_v37 = vmul.f32 %v1147_v32, %v1652_v33  ;;  %v1280_v38 = vpop.f32.mrb[3].mxu0 }
 0x121   : > { %v439_v39 = vadd.f32 %v1148_v35, %v431_v37 }
 0x123   : > { %v440_v40 = vmax.f32 %v439_v39, 0.0 }
 0x125   : > { %v441_v41 = vpack.c.bf16 %v440_v40, %v440_v40 }
 0x127   : > { %442 = vst [vmem:[#allocation2 + $0x4] sm:$0xf] %v441_v41 }
 0x12e   : > { %v1380_v42 = vld [vmem:[#allocation2 + $0x4] ss:$0 sps:$4 sm:$0xff]   ;;  %v1382_v44 = vld [vmem:[#allocation2 + $0x4] sm:$0x1e]  }
 0x12f   : > { %v1381_v43 = vld [vmem:[#allocation2] sm:$0x78]   ;;  %700 = vmatprep.mubr.bf16.mxu1 %v1380_v42  ;;  %v1154_v48 = vrot.slane %v1382_v44, 9 }
 0x130   : > { %v518_v47 = vrot.slane %v1381_v43, 3 }
 0x131   : > { %1298 = vmatmul.mubr.bf16.vlgmr.msra.gmra.mrb[4].mxu0 %v1154_v48 }
 0x132   : > { %701 = vmatmul.mubr.bf16.vlgmr.msra.gmra.mrb[0].mxu1 %v518_v47  ;;  %1302 = vmatpush3.bf16.msra.mxu0 %v1385_v46 }
 0x133   : > { %1245 = vmatpush3.bf16.msra.mxu1 %v1384_v45  ;;  %1303 = vmatprep.subr.bf16.mxu0 %v1486_v0 }
 0x134   : > { %1246 = vmatprep.subr.bf16.mxu1 %v1386_v49  ;;  %1317 = vmatprep.mubr.msk.bf16.mxu0 %vm1487_vm0, %v1486_v0 }
 0x136   : > { %1304 = vmatpush3.bf16.msra.mxu0 %v1388_v51 }
 0x137   : > { %1247 = vmatpush3.bf16.msra.mxu1 %v1387_v50  ;;  %1305 = vmatprep.subr.bf16.mxu0 %v1486_v0 }
 0x138   : > { %1248 = vmatprep.subr.bf16.mxu1 %v1389_v52 }
 0x13a   : > { %1306 = vmatpush3.bf16.msra.mxu0 %v1391_v54 }
 0x13b   : > { %1249 = vmatpush3.bf16.msra.mxu1 %v1390_v53  ;;  %1307 = vmatprep.subr.bf16.mxu0 %v1486_v0 }
 0x13c   : > { %1250 = vmatprep.subr.bf16.mxu1 %v1392_v55 }
 0x13e   : > { %1308 = vmatpush3.bf16.msra.mxu0 %v1394_v57 }
 0x13f   : > { %1251 = vmatpush3.bf16.msra.mxu1 %v1393_v56  ;;  %1309 = vmatprep.subr.bf16.mxu0 %v1486_v0 }
 0x140   : > { %1252 = vmatprep.subr.bf16.mxu1 %v1395_v58 }
 0x142   : > { %1310 = vmatpush3.bf16.msra.mxu0 %v1397_v60 }
 0x143   : > { %1253 = vmatpush3.bf16.msra.mxu1 %v1396_v59  ;;  %1311 = vmatprep.subr.bf16.mxu0 %v1486_v0 }
 0x144   : > { %1254 = vmatprep.subr.bf16.mxu1 %v1398_v61 }
 0x146   : > { %1312 = vmatpush3.bf16.msra.mxu0 %v1400_v63 }
 0x147   : > { %1255 = vmatpush3.bf16.msra.mxu1 %v1399_v62  ;;  %1313 = vmatprep.subr.bf16.mxu0 %v1486_v0 }
 0x148   : > { %1256 = vmatprep.subr.bf16.mxu1 %v1401_v1 }
 0x14a   : > { %1314 = vmatpush3.bf16.msra.mxu0 %v1403_v3 }
 0x14b   : > { %1257 = vmatpush3.bf16.msra.mxu1 %v1402_v2  ;;  %1315 = vmatprep.subr.bf16.mxu0 %v1486_v0 }
 0x14c   : > { %1258 = vmatprep.subr.bf16.mxu1 %v1404_v4 }
 0x14e   : > { %1316 = vmatpush3.bf16.msra.mxu0 %v1406_v6 }
 0x14f   : > { %1259 = vmatpush3.bf16.msra.mxu1 %v1405_v5 }
 0x204   : > { %v742_v8 = vpop.f32.mrb[4].mxu0 }
 0x205   : > { %v1229_v7 = vpop.f32.mrb[0].mxu1  ;;  %v1299_v11 = vpop.f32.mrb[5].mxu0 }
 0x206   : > { %v1230_v10 = vpop.f32.mrb[1].mxu1  ;;  %v745_v14 = vpop.f32.mrb[6].mxu0 }
 0x207   : > { %v1231_v12 = vadd.f32 %v1230_v10, %v1229_v7  ;;  %v1232_v13 = vpop.f32.mrb[2].mxu1  ;;  %v1300_v16 = vpop.f32.mrb[7].mxu0 }
 0x208   : > { %v1233_v15 = vpop.f32.mrb[3].mxu1 }
 0x209   : > { %v703_v17 = vadd.f32 %v1231_v12, %v1152_v9 }
 0x20b   : > { %v743_v18 = vadd.f32 %v742_v8, %v703_v17 }
 0x20d   : > { %v748_v19 = vmax.f32 %v743_v18, 0.0 }
 0x20f   : > { %v749_v20 = vpack.c.bf16 %v748_v19, %v748_v19 }
 0x211   : > { %750 = vst [vmem:[#allocation2 + $0x4] sm:$0xf] %v749_v20 }
 0x218   : > { %v1407_v0 = vld [vmem:[#allocation2 + $0x4] ss:$0 sps:$4 sm:$0xff]   ;;  %v1409_v22 = vld [vmem:[#allocation2 + $0x4] sm:$0x1e]  }
 0x219   : > { %v1408_v21 = vld [vmem:[#allocation2] sm:$0x78]   ;;  %1008 = vmatprep.mubr.bf16.mxu1 %v1407_v0  ;;  %v1184_v24 = vrot.slane %v1409_v22, 9 }
 0x21a   : > { %v826_v23 = vrot.slane %v1408_v21, 3 }
 0x21b   : > { %1318 = vmatmul.mubr.bf16.vlgmr.msra.gmra.mrb[8].mxu0 %v1184_v24 }
 0x21c   : > { %1009 = vmatmul.mubr.bf16.vlgmr.msra.gmra.mrb[4].mxu1 %v826_v23 }
 0x2ee   : > { %v1050_v26 = vpop.f32.mrb[8].mxu0 }
 0x2ef   : > { %v1260_v25 = vpop.f32.mrb[4].mxu1  ;;  %v1319_v29 = vpop.f32.mrb[9].mxu0 }
 0x2f0   : > { %v1261_v28 = vpop.f32.mrb[5].mxu1  ;;  %v1053_v32 = vpop.f32.mrb[10].mxu0 }
 0x2f1   : > { %v1262_v30 = vadd.f32 %v1261_v28, %v1260_v25  ;;  %v1263_v31 = vpop.f32.mrb[6].mxu1  ;;  %v1320_v35 = vpop.f32.mrb[11].mxu0 }
 0x2f2   : > { %v1264_v34 = vpop.f32.mrb[7].mxu1 }
 0x2f3   : > { %v1011_v36 = vadd.f32 %v1262_v30, %v1182_v27 }
 0x2f5   : > { %v1051_v37 = vadd.f32 %v1050_v26, %v1011_v36 }
 0x2f7   : > { %v1056_v38 = vadd.f32 %v1051_v37, %v1652_v33 }
 0x2f9   : > { %1057 = vst [vmem:[%s357_s13] sm:$0xff] %v1056_v38 }
 0x2fa PF: > { %s21_s30 = sadd.s32 1, %s1480_s30  }
 0x2fb   : > { %p18_p5 = scmp.ge.s32.totalorder %s21_s30, 4  }
 0x2fd   :  { %20 = sbr.rel (!%p18_p5) target bundleno = 2 (0x2), region = 95 }
 0x304   :  { %1077 = vsyncpa [#allocation4], 1 }
 0x305   :  { %1079 = vsyncpa [#allocation4 + $0x1], 1 }
 0x306   :  { %1080 = vsyncpa [#allocation6], 1 }

</bundles_post_ra>
